<compile_context>
chip_gen: v5e
topology: v5e:2x2
jax: 0.10.0
libtpu: 0.0.40
codegen_flags: <defaults>
</compile_context>

<pallas_src>
import functools

import jax
import jax.numpy as jnp
from jax import lax
from jax.experimental import pallas as pl
from jax.experimental.pallas import tpu as pltpu

LANE = 128     # lane width: head output widths padded to this for unmasked stores
SUBLANE = 8    # f32 sublane multiple: batch padded to this


def _round_up(x, m):
    return ((x + m - 1) // m) * m


def _full_spec(shape):
    """Full-array block with a constant index map (ignores grid + prefetch args)."""
    nd = len(shape)
    return pl.BlockSpec(shape, lambda *args, _nd=nd: (0,) * _nd)


# ----------------------------------------------------------------------------- kernel

def fused_forward_kernel(n_layers, S, Bp, ids_ref, emb_hbm, *refs):
    """Gathered embedding -> stacked tanh RNN -> LayerNorm -> fc1 -> ReLU -> fc2.

    ids_ref : SMEM (S*Bp,) int32 token ids, time-major flattened, batch padded to Bp
    emb_hbm : HBM (vocab, E) f32 embedding table (memory_space=pl.ANY)
    refs    : per layer: wih_t (in,H), whh_t (H,H), b (1,H)   [b = b_ih + b_hh]
              then ln_gamma (1,H), ln_beta (1,H),
              fc1_w_t (H,LANE), fc1_b (1,LANE), fc2_w_t (LANE,LANE), fc2_b (1,LANE),
              o_ref (Bp,LANE),
              x_buf (S*Bp,E), xw_buf (S*Bp,H), act_buf (S*Bp,H), sem (DMA,(1,))
    """
    layer_refs = refs[: 3 * n_layers]
    (gamma_ref, beta_ref, w1_ref, b1_ref, w2_ref, b2_ref,
     o_ref, x_buf, xw_buf, act_buf, sem) = refs[3 * n_layers:]

    n_rows = S * Bp

    # ---- embedding gather fused into the kernel: one small row-DMA per token ----
    @pl.loop(0, n_rows)
    def _issue(r):
        tok = ids_ref[r]
        pltpu.make_async_copy(emb_hbm.at[tok], x_buf.at[r], sem.at[0]).start()

    @pl.loop(0, n_rows)
    def _drain(r):
        # Same-sized descriptor; each wait retires one issued row copy.
        pltpu.make_async_copy(emb_hbm.at[0], x_buf.at[0], sem.at[0]).wait()

    # ---- stacked tanh RNN ----
    H = layer_refs[1].shape[0]
    h = jnp.zeros((Bp, H), jnp.float32)
    for l in range(n_layers):
        wih = layer_refs[3 * l][...]            # (in, H)
        whh = layer_refs[3 * l + 1][...]        # (H, H)
        b = layer_refs[3 * l + 2][...]          # (1, H)

        inp_ref = x_buf if l == 0 else act_buf
        # Hoisted input projection: one (S*Bp, in) x (in, H) MXU matmul per layer.
        xw_buf[...] = jnp.dot(inp_ref[...], wih,
                              preferred_element_type=jnp.float32) + b

        is_last = (l == n_layers - 1)

        def step(t, h, _last=is_last, _whh=whh):
            start = pl.multiple_of(t * Bp, Bp)
            xw_t = xw_buf[pl.ds(start, Bp), :]
            # TODO(synk): keep whh resident in the MXU weight registers across the
            # unrolled time loop (pltpu.matmul_push_rhs / matmul_acc_lhs / matmul_pop)
            # if bundle dumps show Mosaic re-pushing the same RHS every step.
            h = jnp.tanh(xw_t + jnp.dot(h, _whh,
                                        preferred_element_type=jnp.float32))
            if not _last:
                act_buf[pl.ds(start, Bp), :] = h   # tile-aligned single-slab store
            return h

        h = lax.fori_loop(0, S, step, jnp.zeros((Bp, H), jnp.float32), unroll=True)

    # ---- head: LayerNorm -> dropout (identity, eval) -> fc1 -> ReLU -> fc2 ----
    mean = jnp.mean(h, axis=-1, keepdims=True)
    var = jnp.mean((h - mean) ** 2, axis=-1, keepdims=True)
    hn = (h - mean) * lax.rsqrt(var + 1e-5)
    hn = hn * gamma_ref[...] + beta_ref[...]
    # TODO(synk): dropout is identity in eval mode; training-mode RNG dropout not implemented.
    z = jnp.maximum(
        jnp.dot(hn, w1_ref[...], preferred_element_type=jnp.float32) + b1_ref[...],
        0.0)
    # Lane-dense (Bp, 128) unmasked store; wrapper slices back to (B, n_classes).
    o_ref[...] = jnp.dot(z, w2_ref[...],
                         preferred_element_type=jnp.float32) + b2_ref[...]


# ----------------------------------------------------------------------------- wrapper

def sentiment_forward(token_ids, params):
    """token_ids: (B, S) int32.  Returns logits (B, n_classes) float32."""
    B, S = token_ids.shape
    n_layers = len(params["rnn"])
    H = params["rnn"][0]["whh_t"].shape[0]
    E = params["embedding"].shape[1]
    C = params["fc2_b"].shape[-1]
    F1 = params["fc1_b"].shape[-1]

    Bp = _round_up(max(B, SUBLANE), SUBLANE)     # sublane-aligned batch
    F1p = _round_up(max(F1, LANE), LANE)         # lane-dense fc1 width
    Cp = _round_up(max(C, LANE), LANE)           # lane-dense output width

    # Time-major, batch-padded (with a valid token id), flattened -> SMEM prefetch.
    ids = jnp.pad(token_ids.T.astype(jnp.int32), ((0, 0), (0, Bp - B)))
    ids = ids.reshape(S * Bp)

    # Zero-pad the tiny head matrices so fc1/fc2/output stores are unmasked, lane-dense.
    # (At real sizes these would be pre-padded once outside the step function.)
    w1 = jnp.pad(params["fc1_w_t"], ((0, 0), (0, F1p - F1)))
    b1 = jnp.pad(params["fc1_b"], ((0, 0), (0, F1p - F1)))
    w2 = jnp.pad(params["fc2_w_t"], ((0, F1p - F1), (0, Cp - C)))
    b2 = jnp.pad(params["fc2_b"], ((0, 0), (0, Cp - C)))

    layer_args = []
    for layer in params["rnn"]:
        layer_args += [layer["wih_t"], layer["whh_t"], layer["b"]]
    vmem_args = layer_args + [params["ln_gamma"], params["ln_beta"], w1, b1, w2, b2]

    kernel = functools.partial(fused_forward_kernel, n_layers, S, Bp)

    # TODO(synk): at non-toy batch, add a ("parallel",) batch-block grid axis so the
    # recurrence shards across v7x's two TensorCores, and re-derive the batch block so
    # the resident (S, B_blk, H) activations fit v7x's 64 MiB VMEM (vs 128 MiB v5e/v6e);
    # on v6e/v7x also store weights/embedding in bf16 for the MXU (keep h/tanh/LN in f32).
    logits = pl.pallas_call(
        kernel,
        out_shape=jax.ShapeDtypeStruct((Bp, Cp), jnp.float32),
        grid_spec=pltpu.PrefetchScalarGridSpec(
            num_scalar_prefetch=1,
            grid=(1,),
            in_specs=[pl.BlockSpec(memory_space=pl.ANY)]            # embedding in HBM
                     + [_full_spec(a.shape) for a in vmem_args],    # weights in VMEM
            out_specs=_full_spec((Bp, Cp)),
            scratch_shapes=[
                pltpu.VMEM((S * Bp, E), jnp.float32),   # gathered embeddings
                pltpu.VMEM((S * Bp, H), jnp.float32),   # hoisted input projection
                pltpu.VMEM((S * Bp, H), jnp.float32),   # inter-layer activations
                pltpu.SemaphoreType.DMA((1,)),
            ]),
        compiler_params=pltpu.CompilerParams(
            dimension_semantics=("arbitrary",)),
    )(ids, params["embedding"], *vmem_args)

    return logits[:B, :C]


# ----------------------------------------------------------------------------- params & reference

def init_params(key, vocab_size, embedding_dim, hidden_size, n_layers, n_classes):
    keys = jax.random.split(key, 5 + 4 * n_layers)
    k_iter = iter(keys)

    def uniform(k, shape, bound):
        return jax.random.uniform(k, shape, jnp.float32, -bound, bound)

    params = {}
    params["embedding"] = jax.random.normal(next(k_iter), (vocab_size, embedding_dim),
                                            jnp.float32)
    bound = 1.0 / jnp.sqrt(hidden_size)
    rnn_layers = []
    for l in range(n_layers):
        in_dim = embedding_dim if l == 0 else hidden_size
        b_ih = uniform(next(k_iter), (1, hidden_size), bound)
        b_hh = uniform(next(k_iter), (1, hidden_size), bound)
        rnn_layers.append({
            # stored pre-transposed: (in, H) and (H, H); biases pre-combined
            "wih_t": uniform(next(k_iter), (in_dim, hidden_size), bound),
            "whh_t": uniform(next(k_iter), (hidden_size, hidden_size), bound),
            "b": b_ih + b_hh,
        })
    params["rnn"] = rnn_layers

    params["ln_gamma"] = jnp.ones((1, hidden_size), jnp.float32)
    params["ln_beta"] = jnp.zeros((1, hidden_size), jnp.float32)

    b1 = 1.0 / jnp.sqrt(hidden_size)
    params["fc1_w_t"] = uniform(next(k_iter), (hidden_size, 16), b1)
    params["fc1_b"] = uniform(next(k_iter), (1, 16), b1)
    b2 = 1.0 / jnp.sqrt(16)
    params["fc2_w_t"] = uniform(next(k_iter), (16, n_classes), b2)
    params["fc2_b"] = uniform(next(k_iter), (1, n_classes), b2)
    return params


def reference_forward(token_ids, params):
    """Pure-JAX reference mirroring the PyTorch forward (eval mode)."""
    x = params["embedding"][token_ids]              # (B, S, E)
    for layer in params["rnn"]:
        B, S, _ = x.shape
        H = layer["whh_t"].shape[0]
        h = jnp.zeros((B, H), jnp.float32)
        outs = []
        for t in range(S):
            h = jnp.tanh(x[:, t, :] @ layer["wih_t"] + h @ layer["whh_t"] + layer["b"])
            outs.append(h)
        x = jnp.stack(outs, axis=1)                 # (B, S, H)
    h_last = x[:, -1, :]
    mean = jnp.mean(h_last, axis=-1, keepdims=True)
    var = jnp.mean((h_last - mean) ** 2, axis=-1, keepdims=True)
    hn = (h_last - mean) / jnp.sqrt(var + 1e-5)
    hn = hn * params["ln_gamma"] + params["ln_beta"]
    z = jnp.maximum(hn @ params["fc1_w_t"] + params["fc1_b"], 0.0)
    return z @ params["fc2_w_t"] + params["fc2_b"]


# ----------------------------------------------------------------------------- main

if __name__ == "__main__":
    VOCAB, EMBED, HIDDEN, N_LAYERS, N_CLASSES = 50, 32, 32, 2, 2
    B, S = 2, 8

    key = jax.random.PRNGKey(0)
    k_params, k_tokens = jax.random.split(key)
    params = init_params(k_params, VOCAB, EMBED, HIDDEN, N_LAYERS, N_CLASSES)
    token_ids = jax.random.randint(k_tokens, (B, S), 0, VOCAB, dtype=jnp.int32)

    logits = jax.jit(sentiment_forward)(token_ids, params)
    logits = jax.block_until_ready(logits)

    ref = reference_forward(token_ids, params)
    assert logits.shape == (B, N_CLASSES)
    assert jnp.allclose(logits, ref, atol=1e-4, rtol=1e-4), (logits, ref)

    print("KERNEL_OK")
</pallas_src>

<mosaic_0001>
module attributes {stable_mosaic.version = 11 : i64} {
  func.func @fused_forward_kernel(%arg0: i32, %arg1: memref<64xi32, #tpu.memory_space<smem>>, %arg2: memref<50x32xf32, #tpu.memory_space<any>>, %arg3: memref<32x32xf32, #tpu.memory_space<vmem>>, %arg4: memref<32x32xf32, #tpu.memory_space<vmem>>, %arg5: memref<1x32xf32, #tpu.memory_space<vmem>>, %arg6: memref<32x32xf32, #tpu.memory_space<vmem>>, %arg7: memref<32x32xf32, #tpu.memory_space<vmem>>, %arg8: memref<1x32xf32, #tpu.memory_space<vmem>>, %arg9: memref<1x32xf32, #tpu.memory_space<vmem>>, %arg10: memref<1x32xf32, #tpu.memory_space<vmem>>, %arg11: memref<32x128xf32, #tpu.memory_space<vmem>>, %arg12: memref<1x128xf32, #tpu.memory_space<vmem>>, %arg13: memref<128x128xf32, #tpu.memory_space<vmem>>, %arg14: memref<1x128xf32, #tpu.memory_space<vmem>>, %arg15: memref<8x128xf32, #tpu.memory_space<vmem>>, %arg16: memref<64x32xf32, #tpu.memory_space<vmem>>, %arg17: memref<64x32xf32, #tpu.memory_space<vmem>>, %arg18: memref<64x32xf32, #tpu.memory_space<vmem>>, %arg19: memref<1x!tpu.dma_semaphore, #tpu.memory_space<semaphore_mem>>) attributes {dimension_semantics = [#tpu.dimension_semantics<arbitrary>], iteration_bounds = array<i64: 1>, scalar_prefetch = 1 : i64, scratch_operands = 4 : i64, tpu.core_type = #tpu.core_type<tc>, window_params = [{}, {pipeline_mode = #tpu.pipeline_mode<synchronous>, transform_indices = @transform_1, window_bounds = array<i64: 32, 32>}, {pipeline_mode = #tpu.pipeline_mode<synchronous>, transform_indices = @transform_2, window_bounds = array<i64: 32, 32>}, {pipeline_mode = #tpu.pipeline_mode<synchronous>, transform_indices = @transform_3, window_bounds = array<i64: 1, 32>}, {pipeline_mode = #tpu.pipeline_mode<synchronous>, transform_indices = @transform_4, window_bounds = array<i64: 32, 32>}, {pipeline_mode = #tpu.pipeline_mode<synchronous>, transform_indices = @transform_5, window_bounds = array<i64: 32, 32>}, {pipeline_mode = #tpu.pipeline_mode<synchronous>, transform_indices = @transform_6, window_bounds = array<i64: 1, 32>}, {pipeline_mode = #tpu.pipeline_mode<synchronous>, transform_indices = @transform_7, window_bounds = array<i64: 1, 32>}, {pipeline_mode = #tpu.pipeline_mode<synchronous>, transform_indices = @transform_8, window_bounds = array<i64: 1, 32>}, {pipeline_mode = #tpu.pipeline_mode<synchronous>, transform_indices = @transform_9, window_bounds = array<i64: 32, 128>}, {pipeline_mode = #tpu.pipeline_mode<synchronous>, transform_indices = @transform_10, window_bounds = array<i64: 1, 128>}, {pipeline_mode = #tpu.pipeline_mode<synchronous>, transform_indices = @transform_11, window_bounds = array<i64: 128, 128>}, {pipeline_mode = #tpu.pipeline_mode<synchronous>, transform_indices = @transform_12, window_bounds = array<i64: 1, 128>}, {pipeline_mode = #tpu.pipeline_mode<synchronous>, transform_indices = @transform_13, window_bounds = array<i64: 8, 128>}]} {
    %c0_i32 = arith.constant 0 : i32
    %c64_i32 = arith.constant 64 : i32
    %0 = arith.addi %c0_i32, %c64_i32 : i32
    %c1_i32 = arith.constant 1 : i32
    scf.for %arg20 = %c0_i32 to %0 step %c1_i32  : i32 {
      %c1_i32_115 = arith.constant 1 : i32
      %185 = arith.muli %arg20, %c1_i32_115 : i32
      %c0_i32_116 = arith.constant 0 : i32
      %186 = arith.addi %c0_i32_116, %185 : i32
      %187 = arith.index_cast %186 : i32 to index
      %188 = memref.load %arg1[%187] : memref<64xi32, #tpu.memory_space<smem>>
      %c0_i32_117 = arith.constant 0 : i32
      %c0_i32_118 = arith.constant 0 : i32
      %189 = tpu.memref_slice %arg2[%188, %c0_i32_118] : memref<50x32xf32, #tpu.memory_space<any>> -> memref<1x32xf32, #tpu.memory_space<any>>
      %190 = tpu.memref_squeeze %189 : memref<1x32xf32, #tpu.memory_space<any>> -> memref<32xf32, #tpu.memory_space<any>>
      %c0_i32_119 = arith.constant 0 : i32
      %191 = tpu.memref_slice %arg16[%186, %c0_i32_119] : memref<64x32xf32, #tpu.memory_space<vmem>> -> memref<1x32xf32, #tpu.memory_space<vmem>>
      %192 = tpu.memref_squeeze %191 : memref<1x32xf32, #tpu.memory_space<vmem>> -> memref<32xf32, #tpu.memory_space<vmem>>
      %193 = tpu.memref_slice %arg19[%c0_i32_117] : memref<1x!tpu.dma_semaphore, #tpu.memory_space<semaphore_mem>> -> memref<1x!tpu.dma_semaphore, #tpu.memory_space<semaphore_mem>>
      %194 = tpu.memref_squeeze %193 : memref<1x!tpu.dma_semaphore, #tpu.memory_space<semaphore_mem>> -> memref<!tpu.dma_semaphore, #tpu.memory_space<semaphore_mem>>
      tpu.enqueue_dma source(%190 : memref<32xf32, #tpu.memory_space<any>>) target(%192 : memref<32xf32, #tpu.memory_space<vmem>>) target_semaphore(%194 : memref<!tpu.dma_semaphore, #tpu.memory_space<semaphore_mem>>)
    }
    %c64_i32_0 = arith.constant 64 : i32
    %c0_i32_1 = arith.constant 0 : i32
    %c64_i32_2 = arith.constant 64 : i32
    %1 = arith.addi %c0_i32_1, %c64_i32_2 : i32
    %c1_i32_3 = arith.constant 1 : i32
    scf.for %arg20 = %c0_i32_1 to %1 step %c1_i32_3  : i32 {
      %c0_i32_115 = arith.constant 0 : i32
      %c0_i32_116 = arith.constant 0 : i32
      %c0_i32_117 = arith.constant 0 : i32
      %c0_i32_118 = arith.constant 0 : i32
      %185 = tpu.memref_slice %arg2[%c0_i32_115, %c0_i32_118] : memref<50x32xf32, #tpu.memory_space<any>> -> memref<1x32xf32, #tpu.memory_space<any>>
      %186 = tpu.memref_squeeze %185 : memref<1x32xf32, #tpu.memory_space<any>> -> memref<32xf32, #tpu.memory_space<any>>
      %c0_i32_119 = arith.constant 0 : i32
      %187 = tpu.memref_slice %arg16[%c0_i32_116, %c0_i32_119] : memref<64x32xf32, #tpu.memory_space<vmem>> -> memref<1x32xf32, #tpu.memory_space<vmem>>
      %188 = tpu.memref_squeeze %187 : memref<1x32xf32, #tpu.memory_space<vmem>> -> memref<32xf32, #tpu.memory_space<vmem>>
      %189 = tpu.memref_slice %arg19[%c0_i32_117] : memref<1x!tpu.dma_semaphore, #tpu.memory_space<semaphore_mem>> -> memref<1x!tpu.dma_semaphore, #tpu.memory_space<semaphore_mem>>
      %190 = tpu.memref_squeeze %189 : memref<1x!tpu.dma_semaphore, #tpu.memory_space<semaphore_mem>> -> memref<!tpu.dma_semaphore, #tpu.memory_space<semaphore_mem>>
      tpu.wait_dma2 semaphore(%190 : memref<!tpu.dma_semaphore, #tpu.memory_space<semaphore_mem>>) src(%186 : memref<32xf32, #tpu.memory_space<any>>) dst(%188 : memref<32xf32, #tpu.memory_space<vmem>>)
    }
    %c0 = arith.constant 0 : index
    %c0_4 = arith.constant 0 : index
    %2 = vector.load %arg3[%c0, %c0_4] : memref<32x32xf32, #tpu.memory_space<vmem>>, vector<32x32xf32>
    %c0_5 = arith.constant 0 : index
    %c0_6 = arith.constant 0 : index
    %3 = vector.load %arg4[%c0_5, %c0_6] : memref<32x32xf32, #tpu.memory_space<vmem>>, vector<32x32xf32>
    %c0_7 = arith.constant 0 : index
    %c0_8 = arith.constant 0 : index
    %4 = vector.load %arg5[%c0_7, %c0_8] : memref<1x32xf32, #tpu.memory_space<vmem>>, vector<1x32xf32>
    %c0_9 = arith.constant 0 : index
    %c0_10 = arith.constant 0 : index
    %5 = vector.load %arg16[%c0_9, %c0_10] : memref<64x32xf32, #tpu.memory_space<vmem>>, vector<64x32xf32>
    %cst = arith.constant dense<0.000000e+00> : vector<64x32xf32>
    %6 = tpu.matmul %5, %2, %cst {dimension_numbers = #tpu.dot_dimension_numbers<[1], [0], [0], [1], [0, 0, 1, 1], [], []>} : vector<64x32xf32>, vector<32x32xf32>, vector<64x32xf32> -> vector<64x32xf32>
    %7 = vector.broadcast %4 : vector<1x32xf32> to vector<64x32xf32>
    %8 = arith.addf %6, %7 : vector<64x32xf32>
    %c0_11 = arith.constant 0 : index
    %c0_12 = arith.constant 0 : index
    %9 = vector.load %arg17[%c0_11, %c0_12] : memref<64x32xf32, #tpu.memory_space<vmem>>, vector<64x32xf32>
    tpu.vector_store %arg17[%c0_11, %c0_12], %8 {strides = array<i32>} : memref<64x32xf32, #tpu.memory_space<vmem>>, vector<64x32xf32>,
    %cst_13 = arith.constant 0.000000e+00 : f32
    %10 = vector.broadcast %cst_13 : f32 to vector<8x32xf32>
    %c0_i32_14 = arith.constant 0 : i32
    %c8_i32 = arith.constant 8 : i32
    %11 = arith.muli %c0_i32_14, %c8_i32 : i32
    %12 = tpu.assume_multiple %11, 8 : i32
    %13 = arith.index_cast %12 : i32 to index
    %c0_15 = arith.constant 0 : index
    %14 = vector.load %arg17[%13, %c0_15] : memref<64x32xf32, #tpu.memory_space<vmem>>, vector<8x32xf32>
    %cst_16 = arith.constant dense<0.000000e+00> : vector<8x32xf32>
    %15 = tpu.matmul %10, %3, %cst_16 {dimension_numbers = #tpu.dot_dimension_numbers<[1], [0], [0], [1], [0, 0, 1, 1], [], []>} : vector<8x32xf32>, vector<32x32xf32>, vector<8x32xf32> -> vector<8x32xf32>
    %16 = arith.addf %14, %15 : vector<8x32xf32>
    %17 = math.tanh %16 : vector<8x32xf32>
    %18 = arith.index_cast %12 : i32 to index
    %c0_17 = arith.constant 0 : index
    %19 = vector.load %arg18[%18, %c0_17] : memref<64x32xf32, #tpu.memory_space<vmem>>, vector<8x32xf32>
    tpu.vector_store %arg18[%18, %c0_17], %17 {strides = array<i32>} : memref<64x32xf32, #tpu.memory_space<vmem>>, vector<8x32xf32>,
    %c1_i32_18 = arith.constant 1 : i32
    %c8_i32_19 = arith.constant 8 : i32
    %20 = arith.muli %c1_i32_18, %c8_i32_19 : i32
    %21 = tpu.assume_multiple %20, 8 : i32
    %22 = arith.index_cast %21 : i32 to index
    %c0_20 = arith.constant 0 : index
    %23 = vector.load %arg17[%22, %c0_20] : memref<64x32xf32, #tpu.memory_space<vmem>>, vector<8x32xf32>
    %cst_21 = arith.constant dense<0.000000e+00> : vector<8x32xf32>
    %24 = tpu.matmul %17, %3, %cst_21 {dimension_numbers = #tpu.dot_dimension_numbers<[1], [0], [0], [1], [0, 0, 1, 1], [], []>} : vector<8x32xf32>, vector<32x32xf32>, vector<8x32xf32> -> vector<8x32xf32>
    %25 = arith.addf %23, %24 : vector<8x32xf32>
    %26 = math.tanh %25 : vector<8x32xf32>
    %27 = arith.index_cast %21 : i32 to index
    %c0_22 = arith.constant 0 : index
    %28 = vector.load %arg18[%27, %c0_22] : memref<64x32xf32, #tpu.memory_space<vmem>>, vector<8x32xf32>
    tpu.vector_store %arg18[%27, %c0_22], %26 {strides = array<i32>} : memref<64x32xf32, #tpu.memory_space<vmem>>, vector<8x32xf32>,
    %c2_i32 = arith.constant 2 : i32
    %c8_i32_23 = arith.constant 8 : i32
    %29 = arith.muli %c2_i32, %c8_i32_23 : i32
    %30 = tpu.assume_multiple %29, 8 : i32
    %31 = arith.index_cast %30 : i32 to index
    %c0_24 = arith.constant 0 : index
    %32 = vector.load %arg17[%31, %c0_24] : memref<64x32xf32, #tpu.memory_space<vmem>>, vector<8x32xf32>
    %cst_25 = arith.constant dense<0.000000e+00> : vector<8x32xf32>
    %33 = tpu.matmul %26, %3, %cst_25 {dimension_numbers = #tpu.dot_dimension_numbers<[1], [0], [0], [1], [0, 0, 1, 1], [], []>} : vector<8x32xf32>, vector<32x32xf32>, vector<8x32xf32> -> vector<8x32xf32>
    %34 = arith.addf %32, %33 : vector<8x32xf32>
    %35 = math.tanh %34 : vector<8x32xf32>
    %36 = arith.index_cast %30 : i32 to index
    %c0_26 = arith.constant 0 : index
    %37 = vector.load %arg18[%36, %c0_26] : memref<64x32xf32, #tpu.memory_space<vmem>>, vector<8x32xf32>
    tpu.vector_store %arg18[%36, %c0_26], %35 {strides = array<i32>} : memref<64x32xf32, #tpu.memory_space<vmem>>, vector<8x32xf32>,
    %c3_i32 = arith.constant 3 : i32
    %c8_i32_27 = arith.constant 8 : i32
    %38 = arith.muli %c3_i32, %c8_i32_27 : i32
    %39 = tpu.assume_multiple %38, 8 : i32
    %40 = arith.index_cast %39 : i32 to index
    %c0_28 = arith.constant 0 : index
    %41 = vector.load %arg17[%40, %c0_28] : memref<64x32xf32, #tpu.memory_space<vmem>>, vector<8x32xf32>
    %cst_29 = arith.constant dense<0.000000e+00> : vector<8x32xf32>
    %42 = tpu.matmul %35, %3, %cst_29 {dimension_numbers = #tpu.dot_dimension_numbers<[1], [0], [0], [1], [0, 0, 1, 1], [], []>} : vector<8x32xf32>, vector<32x32xf32>, vector<8x32xf32> -> vector<8x32xf32>
    %43 = arith.addf %41, %42 : vector<8x32xf32>
    %44 = math.tanh %43 : vector<8x32xf32>
    %45 = arith.index_cast %39 : i32 to index
    %c0_30 = arith.constant 0 : index
    %46 = vector.load %arg18[%45, %c0_30] : memref<64x32xf32, #tpu.memory_space<vmem>>, vector<8x32xf32>
    tpu.vector_store %arg18[%45, %c0_30], %44 {strides = array<i32>} : memref<64x32xf32, #tpu.memory_space<vmem>>, vector<8x32xf32>,
    %c4_i32 = arith.constant 4 : i32
    %c8_i32_31 = arith.constant 8 : i32
    %47 = arith.muli %c4_i32, %c8_i32_31 : i32
    %48 = tpu.assume_multiple %47, 8 : i32
    %49 = arith.index_cast %48 : i32 to index
    %c0_32 = arith.constant 0 : index
    %50 = vector.load %arg17[%49, %c0_32] : memref<64x32xf32, #tpu.memory_space<vmem>>, vector<8x32xf32>
    %cst_33 = arith.constant dense<0.000000e+00> : vector<8x32xf32>
    %51 = tpu.matmul %44, %3, %cst_33 {dimension_numbers = #tpu.dot_dimension_numbers<[1], [0], [0], [1], [0, 0, 1, 1], [], []>} : vector<8x32xf32>, vector<32x32xf32>, vector<8x32xf32> -> vector<8x32xf32>
    %52 = arith.addf %50, %51 : vector<8x32xf32>
    %53 = math.tanh %52 : vector<8x32xf32>
    %54 = arith.index_cast %48 : i32 to index
    %c0_34 = arith.constant 0 : index
    %55 = vector.load %arg18[%54, %c0_34] : memref<64x32xf32, #tpu.memory_space<vmem>>, vector<8x32xf32>
    tpu.vector_store %arg18[%54, %c0_34], %53 {strides = array<i32>} : memref<64x32xf32, #tpu.memory_space<vmem>>, vector<8x32xf32>,
    %c5_i32 = arith.constant 5 : i32
    %c8_i32_35 = arith.constant 8 : i32
    %56 = arith.muli %c5_i32, %c8_i32_35 : i32
    %57 = tpu.assume_multiple %56, 8 : i32
    %58 = arith.index_cast %57 : i32 to index
    %c0_36 = arith.constant 0 : index
    %59 = vector.load %arg17[%58, %c0_36] : memref<64x32xf32, #tpu.memory_space<vmem>>, vector<8x32xf32>
    %cst_37 = arith.constant dense<0.000000e+00> : vector<8x32xf32>
    %60 = tpu.matmul %53, %3, %cst_37 {dimension_numbers = #tpu.dot_dimension_numbers<[1], [0], [0], [1], [0, 0, 1, 1], [], []>} : vector<8x32xf32>, vector<32x32xf32>, vector<8x32xf32> -> vector<8x32xf32>
    %61 = arith.addf %59, %60 : vector<8x32xf32>
    %62 = math.tanh %61 : vector<8x32xf32>
    %63 = arith.index_cast %57 : i32 to index
    %c0_38 = arith.constant 0 : index
    %64 = vector.load %arg18[%63, %c0_38] : memref<64x32xf32, #tpu.memory_space<vmem>>, vector<8x32xf32>
    tpu.vector_store %arg18[%63, %c0_38], %62 {strides = array<i32>} : memref<64x32xf32, #tpu.memory_space<vmem>>, vector<8x32xf32>,
    %c6_i32 = arith.constant 6 : i32
    %c8_i32_39 = arith.constant 8 : i32
    %65 = arith.muli %c6_i32, %c8_i32_39 : i32
    %66 = tpu.assume_multiple %65, 8 : i32
    %67 = arith.index_cast %66 : i32 to index
    %c0_40 = arith.constant 0 : index
    %68 = vector.load %arg17[%67, %c0_40] : memref<64x32xf32, #tpu.memory_space<vmem>>, vector<8x32xf32>
    %cst_41 = arith.constant dense<0.000000e+00> : vector<8x32xf32>
    %69 = tpu.matmul %62, %3, %cst_41 {dimension_numbers = #tpu.dot_dimension_numbers<[1], [0], [0], [1], [0, 0, 1, 1], [], []>} : vector<8x32xf32>, vector<32x32xf32>, vector<8x32xf32> -> vector<8x32xf32>
    %70 = arith.addf %68, %69 : vector<8x32xf32>
    %71 = math.tanh %70 : vector<8x32xf32>
    %72 = arith.index_cast %66 : i32 to index
    %c0_42 = arith.constant 0 : index
    %73 = vector.load %arg18[%72, %c0_42] : memref<64x32xf32, #tpu.memory_space<vmem>>, vector<8x32xf32>
    tpu.vector_store %arg18[%72, %c0_42], %71 {strides = array<i32>} : memref<64x32xf32, #tpu.memory_space<vmem>>, vector<8x32xf32>,
    %c7_i32 = arith.constant 7 : i32
    %c8_i32_43 = arith.constant 8 : i32
    %74 = arith.muli %c7_i32, %c8_i32_43 : i32
    %75 = tpu.assume_multiple %74, 8 : i32
    %76 = arith.index_cast %75 : i32 to index
    %c0_44 = arith.constant 0 : index
    %77 = vector.load %arg17[%76, %c0_44] : memref<64x32xf32, #tpu.memory_space<vmem>>, vector<8x32xf32>
    %cst_45 = arith.constant dense<0.000000e+00> : vector<8x32xf32>
    %78 = tpu.matmul %71, %3, %cst_45 {dimension_numbers = #tpu.dot_dimension_numbers<[1], [0], [0], [1], [0, 0, 1, 1], [], []>} : vector<8x32xf32>, vector<32x32xf32>, vector<8x32xf32> -> vector<8x32xf32>
    %79 = arith.addf %77, %78 : vector<8x32xf32>
    %80 = math.tanh %79 : vector<8x32xf32>
    %81 = arith.index_cast %75 : i32 to index
    %c0_46 = arith.constant 0 : index
    %82 = vector.load %arg18[%81, %c0_46] : memref<64x32xf32, #tpu.memory_space<vmem>>, vector<8x32xf32>
    tpu.vector_store %arg18[%81, %c0_46], %80 {strides = array<i32>} : memref<64x32xf32, #tpu.memory_space<vmem>>, vector<8x32xf32>,
    %c8_i32_47 = arith.constant 8 : i32
    %c0_48 = arith.constant 0 : index
    %c0_49 = arith.constant 0 : index
    %83 = vector.load %arg6[%c0_48, %c0_49] : memref<32x32xf32, #tpu.memory_space<vmem>>, vector<32x32xf32>
    %c0_50 = arith.constant 0 : index
    %c0_51 = arith.constant 0 : index
    %84 = vector.load %arg7[%c0_50, %c0_51] : memref<32x32xf32, #tpu.memory_space<vmem>>, vector<32x32xf32>
    %c0_52 = arith.constant 0 : index
    %c0_53 = arith.constant 0 : index
    %85 = vector.load %arg8[%c0_52, %c0_53] : memref<1x32xf32, #tpu.memory_space<vmem>>, vector<1x32xf32>
    %c0_54 = arith.constant 0 : index
    %c0_55 = arith.constant 0 : index
    %86 = vector.load %arg18[%c0_54, %c0_55] : memref<64x32xf32, #tpu.memory_space<vmem>>, vector<64x32xf32>
    %cst_56 = arith.constant dense<0.000000e+00> : vector<64x32xf32>
    %87 = tpu.matmul %86, %83, %cst_56 {dimension_numbers = #tpu.dot_dimension_numbers<[1], [0], [0], [1], [0, 0, 1, 1], [], []>} : vector<64x32xf32>, vector<32x32xf32>, vector<64x32xf32> -> vector<64x32xf32>
    %88 = vector.broadcast %85 : vector<1x32xf32> to vector<64x32xf32>
    %89 = arith.addf %87, %88 : vector<64x32xf32>
    %c0_57 = arith.constant 0 : index
    %c0_58 = arith.constant 0 : index
    %90 = vector.load %arg17[%c0_57, %c0_58] : memref<64x32xf32, #tpu.memory_space<vmem>>, vector<64x32xf32>
    tpu.vector_store %arg17[%c0_57, %c0_58], %89 {strides = array<i32>} : memref<64x32xf32, #tpu.memory_space<vmem>>, vector<64x32xf32>,
    %cst_59 = arith.constant 0.000000e+00 : f32
    %91 = vector.broadcast %cst_59 : f32 to vector<8x32xf32>
    %c0_i32_60 = arith.constant 0 : i32
    %c8_i32_61 = arith.constant 8 : i32
    %92 = arith.muli %c0_i32_60, %c8_i32_61 : i32
    %93 = tpu.assume_multiple %92, 8 : i32
    %94 = arith.index_cast %93 : i32 to index
    %c0_62 = arith.constant 0 : index
    %95 = vector.load %arg17[%94, %c0_62] : memref<64x32xf32, #tpu.memory_space<vmem>>, vector<8x32xf32>
    %cst_63 = arith.constant dense<0.000000e+00> : vector<8x32xf32>
    %96 = tpu.matmul %91, %84, %cst_63 {dimension_numbers = #tpu.dot_dimension_numbers<[1], [0], [0], [1], [0, 0, 1, 1], [], []>} : vector<8x32xf32>, vector<32x32xf32>, vector<8x32xf32> -> vector<8x32xf32>
    %97 = arith.addf %95, %96 : vector<8x32xf32>
    %98 = math.tanh %97 : vector<8x32xf32>
    %c1_i32_64 = arith.constant 1 : i32
    %c8_i32_65 = arith.constant 8 : i32
    %99 = arith.muli %c1_i32_64, %c8_i32_65 : i32
    %100 = tpu.assume_multiple %99, 8 : i32
    %101 = arith.index_cast %100 : i32 to index
    %c0_66 = arith.constant 0 : index
    %102 = vector.load %arg17[%101, %c0_66] : memref<64x32xf32, #tpu.memory_space<vmem>>, vector<8x32xf32>
    %cst_67 = arith.constant dense<0.000000e+00> : vector<8x32xf32>
    %103 = tpu.matmul %98, %84, %cst_67 {dimension_numbers = #tpu.dot_dimension_numbers<[1], [0], [0], [1], [0, 0, 1, 1], [], []>} : vector<8x32xf32>, vector<32x32xf32>, vector<8x32xf32> -> vector<8x32xf32>
    %104 = arith.addf %102, %103 : vector<8x32xf32>
    %105 = math.tanh %104 : vector<8x32xf32>
    %c2_i32_68 = arith.constant 2 : i32
    %c8_i32_69 = arith.constant 8 : i32
    %106 = arith.muli %c2_i32_68, %c8_i32_69 : i32
    %107 = tpu.assume_multiple %106, 8 : i32
    %108 = arith.index_cast %107 : i32 to index
    %c0_70 = arith.constant 0 : index
    %109 = vector.load %arg17[%108, %c0_70] : memref<64x32xf32, #tpu.memory_space<vmem>>, vector<8x32xf32>
    %cst_71 = arith.constant dense<0.000000e+00> : vector<8x32xf32>
    %110 = tpu.matmul %105, %84, %cst_71 {dimension_numbers = #tpu.dot_dimension_numbers<[1], [0], [0], [1], [0, 0, 1, 1], [], []>} : vector<8x32xf32>, vector<32x32xf32>, vector<8x32xf32> -> vector<8x32xf32>
    %111 = arith.addf %109, %110 : vector<8x32xf32>
    %112 = math.tanh %111 : vector<8x32xf32>
    %c3_i32_72 = arith.constant 3 : i32
    %c8_i32_73 = arith.constant 8 : i32
    %113 = arith.muli %c3_i32_72, %c8_i32_73 : i32
    %114 = tpu.assume_multiple %113, 8 : i32
    %115 = arith.index_cast %114 : i32 to index
    %c0_74 = arith.constant 0 : index
    %116 = vector.load %arg17[%115, %c0_74] : memref<64x32xf32, #tpu.memory_space<vmem>>, vector<8x32xf32>
    %cst_75 = arith.constant dense<0.000000e+00> : vector<8x32xf32>
    %117 = tpu.matmul %112, %84, %cst_75 {dimension_numbers = #tpu.dot_dimension_numbers<[1], [0], [0], [1], [0, 0, 1, 1], [], []>} : vector<8x32xf32>, vector<32x32xf32>, vector<8x32xf32> -> vector<8x32xf32>
    %118 = arith.addf %116, %117 : vector<8x32xf32>
    %119 = math.tanh %118 : vector<8x32xf32>
    %c4_i32_76 = arith.constant 4 : i32
    %c8_i32_77 = arith.constant 8 : i32
    %120 = arith.muli %c4_i32_76, %c8_i32_77 : i32
    %121 = tpu.assume_multiple %120, 8 : i32
    %122 = arith.index_cast %121 : i32 to index
    %c0_78 = arith.constant 0 : index
    %123 = vector.load %arg17[%122, %c0_78] : memref<64x32xf32, #tpu.memory_space<vmem>>, vector<8x32xf32>
    %cst_79 = arith.constant dense<0.000000e+00> : vector<8x32xf32>
    %124 = tpu.matmul %119, %84, %cst_79 {dimension_numbers = #tpu.dot_dimension_numbers<[1], [0], [0], [1], [0, 0, 1, 1], [], []>} : vector<8x32xf32>, vector<32x32xf32>, vector<8x32xf32> -> vector<8x32xf32>
    %125 = arith.addf %123, %124 : vector<8x32xf32>
    %126 = math.tanh %125 : vector<8x32xf32>
    %c5_i32_80 = arith.constant 5 : i32
    %c8_i32_81 = arith.constant 8 : i32
    %127 = arith.muli %c5_i32_80, %c8_i32_81 : i32
    %128 = tpu.assume_multiple %127, 8 : i32
    %129 = arith.index_cast %128 : i32 to index
    %c0_82 = arith.constant 0 : index
    %130 = vector.load %arg17[%129, %c0_82] : memref<64x32xf32, #tpu.memory_space<vmem>>, vector<8x32xf32>
    %cst_83 = arith.constant dense<0.000000e+00> : vector<8x32xf32>
    %131 = tpu.matmul %126, %84, %cst_83 {dimension_numbers = #tpu.dot_dimension_numbers<[1], [0], [0], [1], [0, 0, 1, 1], [], []>} : vector<8x32xf32>, vector<32x32xf32>, vector<8x32xf32> -> vector<8x32xf32>
    %132 = arith.addf %130, %131 : vector<8x32xf32>
    %133 = math.tanh %132 : vector<8x32xf32>
    %c6_i32_84 = arith.constant 6 : i32
    %c8_i32_85 = arith.constant 8 : i32
    %134 = arith.muli %c6_i32_84, %c8_i32_85 : i32
    %135 = tpu.assume_multiple %134, 8 : i32
    %136 = arith.index_cast %135 : i32 to index
    %c0_86 = arith.constant 0 : index
    %137 = vector.load %arg17[%136, %c0_86] : memref<64x32xf32, #tpu.memory_space<vmem>>, vector<8x32xf32>
    %cst_87 = arith.constant dense<0.000000e+00> : vector<8x32xf32>
    %138 = tpu.matmul %133, %84, %cst_87 {dimension_numbers = #tpu.dot_dimension_numbers<[1], [0], [0], [1], [0, 0, 1, 1], [], []>} : vector<8x32xf32>, vector<32x32xf32>, vector<8x32xf32> -> vector<8x32xf32>
    %139 = arith.addf %137, %138 : vector<8x32xf32>
    %140 = math.tanh %139 : vector<8x32xf32>
    %c7_i32_88 = arith.constant 7 : i32
    %c8_i32_89 = arith.constant 8 : i32
    %141 = arith.muli %c7_i32_88, %c8_i32_89 : i32
    %142 = tpu.assume_multiple %141, 8 : i32
    %143 = arith.index_cast %142 : i32 to index
    %c0_90 = arith.constant 0 : index
    %144 = vector.load %arg17[%143, %c0_90] : memref<64x32xf32, #tpu.memory_space<vmem>>, vector<8x32xf32>
    %cst_91 = arith.constant dense<0.000000e+00> : vector<8x32xf32>
    %145 = tpu.matmul %140, %84, %cst_91 {dimension_numbers = #tpu.dot_dimension_numbers<[1], [0], [0], [1], [0, 0, 1, 1], [], []>} : vector<8x32xf32>, vector<32x32xf32>, vector<8x32xf32> -> vector<8x32xf32>
    %146 = arith.addf %144, %145 : vector<8x32xf32>
    %147 = math.tanh %146 : vector<8x32xf32>
    %c8_i32_92 = arith.constant 8 : i32
    %cst_93 = arith.constant dense<0.000000e+00> : vector<8xf32>
    %148 = vector.multi_reduction <add>, %147, %cst_93 [1] : vector<8x32xf32> to vector<8xf32>
    %149 = vector.shape_cast %148 : vector<8xf32> to vector<8x1xf32>
    %cst_94 = arith.constant 3.200000e+01 : f32
    %150 = vector.broadcast %cst_94 : f32 to vector<8x1xf32>
    %151 = arith.divf %149, %150 : vector<8x1xf32>
    %152 = vector.broadcast %151 : vector<8x1xf32> to vector<8x32xf32>
    %153 = arith.subf %147, %152 : vector<8x32xf32>
    %154 = arith.mulf %153, %153 : vector<8x32xf32>
    %cst_95 = arith.constant dense<0.000000e+00> : vector<8xf32>
    %155 = vector.multi_reduction <add>, %154, %cst_95 [1] : vector<8x32xf32> to vector<8xf32>
    %156 = vector.shape_cast %155 : vector<8xf32> to vector<8x1xf32>
    %cst_96 = arith.constant 3.200000e+01 : f32
    %157 = vector.broadcast %cst_96 : f32 to vector<8x1xf32>
    %158 = arith.divf %156, %157 : vector<8x1xf32>
    %159 = vector.broadcast %151 : vector<8x1xf32> to vector<8x32xf32>
    %160 = arith.subf %147, %159 : vector<8x32xf32>
    %cst_97 = arith.constant 9.99999974E-6 : f32
    %161 = vector.broadcast %cst_97 : f32 to vector<8x1xf32>
    %162 = arith.addf %158, %161 : vector<8x1xf32>
    %163 = math.rsqrt %162 : vector<8x1xf32>
    %164 = vector.broadcast %163 : vector<8x1xf32> to vector<8x32xf32>
    %165 = arith.mulf %160, %164 : vector<8x32xf32>
    %c0_98 = arith.constant 0 : index
    %c0_99 = arith.constant 0 : index
    %166 = vector.load %arg9[%c0_98, %c0_99] : memref<1x32xf32, #tpu.memory_space<vmem>>, vector<1x32xf32>
    %167 = vector.broadcast %166 : vector<1x32xf32> to vector<8x32xf32>
    %168 = arith.mulf %165, %167 : vector<8x32xf32>
    %c0_100 = arith.constant 0 : index
    %c0_101 = arith.constant 0 : index
    %169 = vector.load %arg10[%c0_100, %c0_101] : memref<1x32xf32, #tpu.memory_space<vmem>>, vector<1x32xf32>
    %170 = vector.broadcast %169 : vector<1x32xf32> to vector<8x32xf32>
    %171 = arith.addf %168, %170 : vector<8x32xf32>
    %c0_102 = arith.constant 0 : index
    %c0_103 = arith.constant 0 : index
    %172 = vector.load %arg11[%c0_102, %c0_103] : memref<32x128xf32, #tpu.memory_space<vmem>>, vector<32x128xf32>
    %cst_104 = arith.constant dense<0.000000e+00> : vector<8x128xf32>
    %173 = tpu.matmul %171, %172, %cst_104 {dimension_numbers = #tpu.dot_dimension_numbers<[1], [0], [0], [1], [0, 0, 1, 1], [], []>} : vector<8x32xf32>, vector<32x128xf32>, vector<8x128xf32> -> vector<8x128xf32>
    %c0_105 = arith.constant 0 : index
    %c0_106 = arith.constant 0 : index
    %174 = vector.load %arg12[%c0_105, %c0_106] : memref<1x128xf32, #tpu.memory_space<vmem>>, vector<1x128xf32>
    %175 = vector.broadcast %174 : vector<1x128xf32> to vector<8x128xf32>
    %176 = arith.addf %173, %175 : vector<8x128xf32>
    %cst_107 = arith.constant 0.000000e+00 : f32
    %177 = vector.broadcast %cst_107 : f32 to vector<8x128xf32>
    %178 = arith.maximumf %176, %177 : vector<8x128xf32>
    %c0_108 = arith.constant 0 : index
    %c0_109 = arith.constant 0 : index
    %179 = vector.load %arg13[%c0_108, %c0_109] : memref<128x128xf32, #tpu.memory_space<vmem>>, vector<128x128xf32>
    %cst_110 = arith.constant dense<0.000000e+00> : vector<8x128xf32>
    %180 = tpu.matmul %178, %179, %cst_110 {dimension_numbers = #tpu.dot_dimension_numbers<[1], [0], [0], [1], [0, 0, 1, 1], [], []>} : vector<8x128xf32>, vector<128x128xf32>, vector<8x128xf32> -> vector<8x128xf32>
    %c0_111 = arith.constant 0 : index
    %c0_112 = arith.constant 0 : index
    %181 = vector.load %arg14[%c0_111, %c0_112] : memref<1x128xf32, #tpu.memory_space<vmem>>, vector<1x128xf32>
    %182 = vector.broadcast %181 : vector<1x128xf32> to vector<8x128xf32>
    %183 = arith.addf %180, %182 : vector<8x128xf32>
    %c0_113 = arith.constant 0 : index
    %c0_114 = arith.constant 0 : index
    %184 = vector.load %arg15[%c0_113, %c0_114] : memref<8x128xf32, #tpu.memory_space<vmem>>, vector<8x128xf32>
    tpu.vector_store %arg15[%c0_113, %c0_114], %183 {strides = array<i32>} : memref<8x128xf32, #tpu.memory_space<vmem>>, vector<8x128xf32>,
    return
  }
  func.func @transform_1(%arg0: i32, %arg1: memref<64xi32, #tpu.memory_space<smem>>) -> (i32, i32) {
    %c0_i32 = arith.constant 0 : i32
    %c0_i32_0 = arith.constant 0 : i32
    %c0_i32_1 = arith.constant 0 : i32
    return %c0_i32, %c0_i32_0 : i32, i32
  }
  func.func @transform_2(%arg0: i32, %arg1: memref<64xi32, #tpu.memory_space<smem>>) -> (i32, i32) {
    %c0_i32 = arith.constant 0 : i32
    %c0_i32_0 = arith.constant 0 : i32
    %c0_i32_1 = arith.constant 0 : i32
    return %c0_i32, %c0_i32_0 : i32, i32
  }
  func.func @transform_3(%arg0: i32, %arg1: memref<64xi32, #tpu.memory_space<smem>>) -> (i32, i32) {
    %c0_i32 = arith.constant 0 : i32
    %c0_i32_0 = arith.constant 0 : i32
    %c0_i32_1 = arith.constant 0 : i32
    return %c0_i32, %c0_i32_0 : i32, i32
  }
  func.func @transform_4(%arg0: i32, %arg1: memref<64xi32, #tpu.memory_space<smem>>) -> (i32, i32) {
    %c0_i32 = arith.constant 0 : i32
    %c0_i32_0 = arith.constant 0 : i32
    %c0_i32_1 = arith.constant 0 : i32
    return %c0_i32, %c0_i32_0 : i32, i32
  }
  func.func @transform_5(%arg0: i32, %arg1: memref<64xi32, #tpu.memory_space<smem>>) -> (i32, i32) {
    %c0_i32 = arith.constant 0 : i32
    %c0_i32_0 = arith.constant 0 : i32
    %c0_i32_1 = arith.constant 0 : i32
    return %c0_i32, %c0_i32_0 : i32, i32
  }
  func.func @transform_6(%arg0: i32, %arg1: memref<64xi32, #tpu.memory_space<smem>>) -> (i32, i32) {
    %c0_i32 = arith.constant 0 : i32
    %c0_i32_0 = arith.constant 0 : i32
    %c0_i32_1 = arith.constant 0 : i32
    return %c0_i32, %c0_i32_0 : i32, i32
  }
  func.func @transform_7(%arg0: i32, %arg1: memref<64xi32, #tpu.memory_space<smem>>) -> (i32, i32) {
    %c0_i32 = arith.constant 0 : i32
    %c0_i32_0 = arith.constant 0 : i32
    %c0_i32_1 = arith.constant 0 : i32
    return %c0_i32, %c0_i32_0 : i32, i32
  }
  func.func @transform_8(%arg0: i32, %arg1: memref<64xi32, #tpu.memory_space<smem>>) -> (i32, i32) {
    %c0_i32 = arith.constant 0 : i32
    %c0_i32_0 = arith.constant 0 : i32
    %c0_i32_1 = arith.constant 0 : i32
    return %c0_i32, %c0_i32_0 : i32, i32
  }
  func.func @transform_9(%arg0: i32, %arg1: memref<64xi32, #tpu.memory_space<smem>>) -> (i32, i32) {
    %c0_i32 = arith.constant 0 : i32
    %c0_i32_0 = arith.constant 0 : i32
    %c0_i32_1 = arith.constant 0 : i32
    return %c0_i32, %c0_i32_0 : i32, i32
  }
  func.func @transform_10(%arg0: i32, %arg1: memref<64xi32, #tpu.memory_space<smem>>) -> (i32, i32) {
    %c0_i32 = arith.constant 0 : i32
    %c0_i32_0 = arith.constant 0 : i32
    %c0_i32_1 = arith.constant 0 : i32
    return %c0_i32, %c0_i32_0 : i32, i32
  }
  func.func @transform_11(%arg0: i32, %arg1: memref<64xi32, #tpu.memory_space<smem>>) -> (i32, i32) {
    %c0_i32 = arith.constant 0 : i32
    %c0_i32_0 = arith.constant 0 : i32
    %c0_i32_1 = arith.constant 0 : i32
    return %c0_i32, %c0_i32_0 : i32, i32
  }
  func.func @transform_12(%arg0: i32, %arg1: memref<64xi32, #tpu.memory_space<smem>>) -> (i32, i32) {
    %c0_i32 = arith.constant 0 : i32
    %c0_i32_0 = arith.constant 0 : i32
    %c0_i32_1 = arith.constant 0 : i32
    return %c0_i32, %c0_i32_0 : i32, i32
  }
  func.func @transform_13(%arg0: i32, %arg1: memref<64xi32, #tpu.memory_space<smem>>) -> (i32, i32) {
    %c0_i32 = arith.constant 0 : i32
    %c0_i32_0 = arith.constant 0 : i32
    %c0_i32_1 = arith.constant 0 : i32
    return %c0_i32, %c0_i32_0 : i32, i32
  }
}

</mosaic_0001>

<bundles_post_ra>
// kernel: sentiment_forward.1
= control target key start
LH: loop header
LB: loop body
LE: loop exit
PB: predicated region body
PF: predicated region fallthrough
CT: control target
= control target key end

     0   :  { %s987_s16 = smov [#allocation7]   ;;  %s1339_s0 = inlined_call_operand.vmem [shape: s32[64], index: 0, kind: input, shape index: {}]   ;;  %s1340_s1 = inlined_call_operand.vmem [shape: f32[50,32], index: 1, kind: input, shape index: {}]   ;;  %s1341_s2 = inlined_call_operand.vmem [shape: f32[32,32], index: 2, kind: input, shape index: {}]   ;;  %s1342_s3 = inlined_call_operand.vmem [shape: f32[32,32], index: 3, kind: input, shape index: {}]   ;;  %s1343_s4 = inlined_call_operand.vmem [shape: f32[1,32], index: 4, kind: input, shape index: {}]   ;;  %s1344_s5 = inlined_call_operand.vmem [shape: f32[32,32], index: 5, kind: input, shape index: {}]   ;;  %s1345_s6 = inlined_call_operand.vmem [shape: f32[32,32], index: 6, kind: input, shape index: {}]   ;;  %s1346_s7 = inlined_call_operand.vmem [shape: f32[1,32], index: 7, kind: input, shape index: {}]   ;;  %s1347_s8 = inlined_call_operand.vmem [shape: f32[1,32], index: 8, kind: input, shape index: {}]   ;;  %s1348_s9 = inlined_call_operand.vmem [shape: f32[1,32], index: 9, kind: input, shape index: {}]   ;;  %s1349_s10 = inlined_call_operand.vmem [shape: f32[32,128], index: 10, kind: input, shape index: {}]   ;;  %s1350_s11 = inlined_call_operand.vmem [shape: f32[1,128], index: 11, kind: input, shape index: {}]   ;;  %s1351_s12 = inlined_call_operand.vmem [shape: f32[128,128], index: 12, kind: input, shape index: {}]   ;;  %s1352_s13 = inlined_call_operand.vmem [shape: f32[1,128], index: 13, kind: input, shape index: {}]   ;;  %s1353_s14 = inlined_call_operand.vmem [shape: f32[8,128], index: 14, kind: output, shape index: {}]  }
   0x1   :  { %s20_s15 = sshll.u32 %s1339_s0, 4  ;;  %s21_s15 = int_to_ptr.vmem [resolvable:$true] %s20_s15 }
   0x2   :  { %23 = dma.vmem_to_smem %s21_s15, 16, %s987_s16, [#allocation6] }
   0x3   :  { %975 = dma.done.wait [#allocation6], 16 }
   0x4   :  { %976 = vsyncadd [#allocation6], 4294967280 }
   0x5   :  { %26 = sfence }
   0x6   :  { %s979_s17 = smov 0  }
   0x7 LB: > { %s57_s18 = sld [smem:[#allocation7 + %s981_s17]]  ;;  %s59_s22 = scalar_lea.vmem [#allocation2], %s981_s17  ;;  %s981_s17 = sphi %s979_s17, %s56_s17  }
   0xd   : > { %s58_s21 = scalar_lea.vmem %s1340_s1, %s57_s18 }
   0xe   : > { %v74_v0 = vld [vmem:[%s58_s21] sm:$0x1] }
   0xf   : > { %75 = vst [vmem:[%s59_s22] sm:$0x1] %v74_v0 }
  0x10   : > { %93 = vsyncadd [#allocation5], 16  ;;  %s56_s17 = sadd.s32 1, %s981_s17  }
  0x11   : > { %p53_p0 = scmp.ge.s32.totalorder %s56_s17, 64  }
  0x12   :  { %s983_s0 = smov (%p53_p0), 0  }
  0x13   :  { %55 = sbr.rel (!%p53_p0) target bundleno = 7 (0x7), region = 132 }
  0x18 LB: > { %977 = dma.done.wait [#allocation5], 16  ;;  %s985_s0 = sphi %s983_s0, %s99_s0  }
  0x19   : > { %978 = vsyncadd [#allocation5], 4294967280  ;;  %s99_s0 = sadd.s32 1, %s985_s0  }
  0x1a   : > { %p96_p1 = scmp.ge.s32.totalorder %s99_s0, 64  }
  0x1b   :  { %v105_v1 = vld [vmem:[%s1341_s2 + $0x18] sm:$0xff] (%p96_p1)  ;;  %v104_v2 = vld [vmem:[%s1341_s2 + $0x10] sm:$0xff] (%p96_p1)  ;;  %v103_v4 = vld [vmem:[%s1341_s2 + $0x8] sm:$0xff] (%p96_p1)  ;;  %vm122_vm0 = vcmask (%p96_p1), 261120   ;;  %v988_v10 = vmov (%p96_p1), 0.0  }
  0x1c   :  { %98 = sbr.rel (!%p96_p1) target bundleno = 24 (0x18), region = 143  ;;  %159 = vmatpush.msra.mxu0 (%p96_p1), %v105_v1  ;;  %v1080_v3 = vld [vmem:[%s1342_s3 + $0x18] sm:$0xff] (%p96_p1)  ;;  %v102_v5 = vld [vmem:[%s1341_s2] sm:$0xff] (%p96_p1)  ;;  %v1092_v6 = vld [vmem:[%s1342_s3 + $0x10] sm:$0xff] (%p96_p1) }
  0x1d   :  { %212 = vmatpush.msra.mxu1 (%p96_p1), %v1080_v3  ;;  %240 = vmatpush.msra.mxu2 (%p96_p1), %v1080_v3  ;;  %v107_v7 = vld [vmem:[%s1342_s3 + $0x8] sm:$0xff] (%p96_p1)  ;;  %v111_v8 = vld [vmem:[#allocation2] sm:$0xff] (%p96_p1)  ;;  %v113_v21 = vld [vmem:[#allocation2 + $0x10] sm:$0xff] (%p96_p1) }
  0x1e   :  { %160 = vmatpush.msra.mxu0 (%p96_p1), %v104_v2  ;;  %356 = vmatpush.msra.mxu3 (%p96_p1), %v1080_v3  ;;  %v106_v9 = vld [vmem:[%s1342_s3] sm:$0xff] (%p96_p1)  ;;  %v112_v11 = vld [vmem:[#allocation2 + $0x8] sm:$0xff] (%p96_p1)  ;;  %v114_v26 = vld [vmem:[#allocation2 + $0x18] sm:$0xff] (%p96_p1) }
  0x1f   :  { %213 = vmatpush.msra.mxu1 (%p96_p1), %v1092_v6  ;;  %241 = vmatpush.msra.mxu2 (%p96_p1), %v1092_v6  ;;  %v1117_v12 = vld [vmem:[%s1343_s4] ss:$0 sm:$0xff] (%p96_p1)  ;;  %v116_v42 = vld [vmem:[#allocation2 + $0x28] sm:$0xff] (%p96_p1)  ;;  %v429_v43 = vld [vmem:[%s1344_s5 + $0x18] sm:$0xff] (%p96_p1) }
  0x20   :  { %161 = vmatpush.msra.mxu0 (%p96_p1), %v103_v4  ;;  %357 = vmatpush.msra.mxu3 (%p96_p1), %v1092_v6  ;;  %v115_v35 = vld [vmem:[#allocation2 + $0x20] sm:$0xff] (%p96_p1)  ;;  %v428_v44 = vld [vmem:[%s1344_s5 + $0x10] sm:$0xff] (%p96_p1)  ;;  %v427_v45 = vld [vmem:[%s1344_s5 + $0x8] sm:$0xff] (%p96_p1) }
  0x21   :  { %214 = vmatpush.msra.mxu1 %v107_v7  ;;  %242 = vmatpush.msra.mxu2 %v107_v7  ;;  %v426_v46 = vld [vmem:[%s1344_s5] sm:$0xff]  ;;  %v117_v56 = vld [vmem:[#allocation2 + $0x30] sm:$0xff]  ;;  %v1170_v59 = vld [vmem:[%s1345_s6 + $0x18] sm:$0xff] }
  0x22   :  { %162 = vmatpush.msra.mxu0 %v102_v5  ;;  %358 = vmatpush.msra.mxu3 %v107_v7  ;;  %v1176_v60 = vld [vmem:[%s1345_s6 + $0x10] sm:$0xff]  ;;  %v1182_v61 = vld [vmem:[%s1345_s6 + $0x8] sm:$0xff]  ;;  %v1191_v62 = vld [vmem:[%s1345_s6] sm:$0xff] }
  0x23   :  { %862 = vmatmul.msk.f32.vlgmr.msra.gmra.mxu0 %vm122_vm0, %v111_v8  ;;  %215 = vmatpush.msra.mxu1 %v106_v9  ;;  %v1198_v2 = vld [vmem:[%s1346_s7] ss:$0 sm:$0xff] }
  0x24   :  { %216 = vmatmul.f32.vlgmr.msra.gmra.mxu1 %v988_v10  ;;  %243 = vmatpush.msra.mxu2 %v106_v9 }
  0x25   :  { %298 = vmatpush.msrb.mxu1 %v1080_v3  ;;  %359 = vmatpush.msra.mxu3 %v106_v9 }
  0x26   :  { %269 = vmatpush.msrb.mxu2 %v1080_v3 }
  0x27   :  { %299 = vmatpush.msrb.mxu1 %v1092_v6  ;;  %482 = vmatpush.msrb.mxu3 %v429_v43 }
  0x28   :  { %270 = vmatpush.msrb.mxu2 %v1092_v6 }
  0x29   :  { %300 = vmatpush.msrb.mxu1 %v107_v7  ;;  %483 = vmatpush.msrb.mxu3 %v428_v44 }
  0x2a   :  { %271 = vmatpush.msrb.mxu2 %v107_v7 }
  0x2b   :  { %301 = vmatpush.msrb.mxu1 %v106_v9  ;;  %863 = vmatmul.msk.f32.gmra.mxu0 %vm122_vm0, %v112_v11 }
  0x2c   :  { %272 = vmatpush.msrb.mxu2 %v106_v9  ;;  %484 = vmatpush.msrb.mxu3 %v427_v45 }
  0x2d   :  { %385 = vmatpush.msra.mxu1 %v1080_v3 }
  0x2e   :  { %485 = vmatpush.msrb.mxu3 %v426_v46 }
  0x2f   :  { %386 = vmatpush.msra.mxu1 %v1092_v6 }
  0x31   :  { %387 = vmatpush.msra.mxu1 %v107_v7 }
  0x33   :  { %388 = vmatpush.msra.mxu1 %v106_v9  ;;  %864 = vmatmul.msk.f32.gmra.mxu0 %vm122_vm0, %v113_v21 }
  0x3b   :  { %865 = vmatmul.msk.f32.gmra.mxu0 %vm122_vm0, %v114_v26 }
  0x43   :  { %866 = vmatmul.msk.f32.gmra.mxu0 %vm122_vm0, %v115_v35 }
  0x4b   :  { %867 = vmatmul.msk.f32.gmra.mxu0 %vm122_vm0, %v116_v42 }
  0x53   :  { %868 = vmatmul.msk.f32.gmra.mxu0 %vm122_vm0, %v117_v56 }
  0xa0   :  { %v164_v13 = vpop.f32.mrf.mxu0 }
  0xa1   :  { %v165_v14 = vadd.f32 %v1117_v12, %v164_v13  ;;  %v217_v15 = vpop.f32.mrf.mxu1 }
  0xa3   :  { %188 = vst.msk [vmem:[#allocation3] sm:$0xff] %vm122_vm0, %v165_v14 }
  0xa8   :  { %v167_v19 = vpop.f32.mrf.mxu0 }
  0xa9   :  { %v168_v20 = vadd.f32 %v1117_v12, %v167_v19 }
  0xaa   :  { %v196_v16 = vld [vmem:[#allocation3] sm:$0xff] }
  0xab   :  { %v220_v17 = vadd.f32 %v217_v15, %v196_v16  ;;  %189 = vst.msk [vmem:[#allocation3 + $0x8] sm:$0xff] %vm122_vm0, %v168_v20 }
  0xad   :  { %919 = vtanh.f32 %v220_v17 }
  0xb0   :  { %v170_v27 = vpop.f32.mrf.mxu0 }
  0xb1   :  { %v171_v28 = vadd.f32 %v1117_v12, %v170_v27 }
  0xb2   :  { %v224_v22 = vld [vmem:[#allocation3 + $0x8] sm:$0xff] }
  0xb3   :  { %v920_v18 = vpop.eup %919  ;;  %190 = vst.msk [vmem:[#allocation3 + $0x10] sm:$0xff] %vm122_vm0, %v171_v28 }
  0xb4   :  { %222 = vst.msk [vmem:[#allocation4] sm:$0xff] %vm122_vm0, %v920_v18  ;;  %870 = vmatmul.msk.f32.vlgmr.msra.gmra.mxu2 %vm122_vm0, %v920_v18  ;;  %v118_v18 = vld [vmem:[#allocation2 + $0x38] sm:$0xff] }
  0xb5   :  { %327 = vmatpush.msra.mxu2 %v1080_v3  ;;  %869 = vmatmul.msk.f32.gmra.mxu0 %vm122_vm0, %v118_v18  ;;  %v766_v18 = vld [vmem:[%s1349_s10 + $0x18] sm:$0xff] }
  0xb7   :  { %328 = vmatpush.msra.mxu2 %v1092_v6 }
  0xb8   :  { %v173_v33 = vpop.f32.mrf.mxu0 }
  0xb9   :  { %329 = vmatpush.msra.mxu2 %v107_v7  ;;  %v174_v34 = vadd.f32 %v1117_v12, %v173_v33 }
  0xba   :  { %v253_v29 = vld [vmem:[#allocation3 + $0x10] sm:$0xff] }
  0xbb   :  { %330 = vmatpush.msra.mxu2 %v106_v9  ;;  %191 = vst.msk [vmem:[#allocation3 + $0x18] sm:$0xff] %vm122_vm0, %v174_v34  ;;  %v435_v51 = vld [vmem:[#allocation4] sm:$0xff] }
  0xc0   :  { %v176_v40 = vpop.f32.mrf.mxu0 }
  0xc1   :  { %v177_v41 = vadd.f32 %v1117_v12, %v176_v40 }
  0xc2   :  { %v282_v36 = vld [vmem:[#allocation3 + $0x18] sm:$0xff] }
  0xc3   :  { %192 = vst.msk [vmem:[#allocation3 + $0x20] sm:$0xff] %vm122_vm0, %v177_v41 }
  0xc8   :  { %v179_v57 = vpop.f32.mrf.mxu0 }
  0xc9   :  { %v180_v58 = vadd.f32 %v1117_v12, %v179_v57 }
  0xca   :  { %v311_v47 = vld [vmem:[#allocation3 + $0x20] sm:$0xff] }
  0xcb   :  { %193 = vst.msk [vmem:[#allocation3 + $0x28] sm:$0xff] %vm122_vm0, %v180_v58 }
  0xd0   :  { %v182_v16 = vpop.f32.mrf.mxu0 }
  0xd1   :  { %v183_v17 = vadd.f32 %v1117_v12, %v182_v16 }
  0xd2   :  { %v340_v63 = vld [vmem:[#allocation3 + $0x28] sm:$0xff] }
  0xd3   :  { %194 = vst.msk [vmem:[#allocation3 + $0x30] sm:$0xff] %vm122_vm0, %v183_v17 }
  0xda   :  { %v369_v19 = vld [vmem:[#allocation3 + $0x30] sm:$0xff] }
 0x137   :  { %v245_v23 = vpop.f32.mrf.mxu2 }
 0x138   :  { %v248_v24 = vadd.f32 %v245_v23, %v224_v22 }
 0x13a   :  { %921 = vtanh.f32 %v248_v24 }
 0x140   :  { %v922_v25 = vpop.eup %921 }
 0x141   :  { %251 = vst.msk [vmem:[#allocation4 + $0x8] sm:$0xff] %vm122_vm0, %v922_v25  ;;  %871 = vmatmul.msk.f32.vlgmr.msrb.gmra.mxu2 %vm122_vm0, %v922_v25 }
 0x142   :  { %414 = vmatpush.msrb.mxu2 %v1080_v3 }
 0x144   :  { %415 = vmatpush.msrb.mxu2 %v1092_v6 }
 0x146   :  { %416 = vmatpush.msrb.mxu2 %v107_v7 }
 0x148   :  { %417 = vmatpush.msrb.mxu2 %v106_v9  ;;  %v436_v52 = vld [vmem:[#allocation4 + $0x8] sm:$0xff] }
 0x1c4   :  { %v274_v30 = vpop.f32.mrf.mxu2 }
 0x1c5   :  { %v277_v31 = vadd.f32 %v274_v30, %v253_v29  ;;  %v185_v30 = vpop.f32.mrf.mxu0 }
 0x1c7   :  { %923 = vtanh.f32 %v277_v31  ;;  %v186_v31 = vadd.f32 %v1117_v12, %v185_v30  ;;  %v805_v30 = vld [vmem:[%s1351_s12 + $0x50] sm:$0xff] }
 0x1c9   :  { %195 = vst.msk [vmem:[#allocation3 + $0x38] sm:$0xff] %vm122_vm0, %v186_v31  ;;  %v804_v31 = vld [vmem:[%s1351_s12 + $0x48] sm:$0xff] }
 0x1cd   :  { %v924_v32 = vpop.eup %923 }
 0x1ce   :  { %280 = vst.msk [vmem:[#allocation4 + $0x10] sm:$0xff] %vm122_vm0, %v924_v32  ;;  %872 = vmatmul.msk.f32.vlgmr.msrb.gmra.mxu1 %vm122_vm0, %v924_v32 }
 0x1cf   :  { %532 = vmatpush.msrb.mxu1 %v1170_v59 }
 0x1d0   :  { %v398_v32 = vld [vmem:[#allocation3 + $0x38] sm:$0xff] }
 0x1d1   :  { %533 = vmatpush.msrb.mxu1 %v1176_v60 }
 0x1d3   :  { %534 = vmatpush.msrb.mxu1 %v1182_v61 }
 0x1d5   :  { %v437_v53 = vld [vmem:[#allocation4 + $0x10] sm:$0xff]  ;;  %535 = vmatpush.msrb.mxu1 %v1191_v62 }
 0x24b   :  { %v303_v37 = vpop.f32.mrf.mxu1 }
 0x24c   :  { %v306_v38 = vadd.f32 %v303_v37, %v282_v36 }
 0x24e   :  { %925 = vtanh.f32 %v306_v38 }
 0x254   :  { %v926_v39 = vpop.eup %925 }
 0x255   :  { %309 = vst.msk [vmem:[#allocation4 + $0x18] sm:$0xff] %vm122_vm0, %v926_v39  ;;  %873 = vmatmul.msk.f32.vlgmr.msra.gmra.mxu2 %vm122_vm0, %v926_v39 }
 0x256   :  { %558 = vmatpush.msra.mxu2 %v1170_v59 }
 0x258   :  { %559 = vmatpush.msra.mxu2 %v1176_v60 }
 0x25a   :  { %560 = vmatpush.msra.mxu2 %v1182_v61 }
 0x25c   :  { %v438_v54 = vld [vmem:[#allocation4 + $0x18] sm:$0xff]  ;;  %561 = vmatpush.msra.mxu2 %v1191_v62 }
 0x2d8   :  { %v332_v48 = vpop.f32.mrf.mxu2 }
 0x2d9   :  { %v335_v49 = vadd.f32 %v332_v48, %v311_v47 }
 0x2db   :  { %927 = vtanh.f32 %v335_v49 }
 0x2e1   :  { %v928_v50 = vpop.eup %927 }
 0x2e2   :  { %338 = vst.msk [vmem:[#allocation4 + $0x20] sm:$0xff] %vm122_vm0, %v928_v50  ;;  %874 = vmatmul.msk.f32.vlgmr.msra.gmra.mxu3 %vm122_vm0, %v928_v50 }
 0x2e9   :  { %v439_v55 = vld [vmem:[#allocation4 + $0x20] sm:$0xff] }
 0x2ea   :  { %877 = vmatmul.msk.f32.vlgmr.msrb.gmra.mxu3 %vm122_vm0, %v435_v51 }
 0x2f2   :  { %878 = vmatmul.msk.f32.gmra.mxu3 %vm122_vm0, %v436_v52 }
 0x2fa   :  { %879 = vmatmul.msk.f32.gmra.mxu3 %vm122_vm0, %v437_v53 }
 0x302   :  { %880 = vmatmul.msk.f32.gmra.mxu3 %vm122_vm0, %v438_v54 }
 0x30a   :  { %881 = vmatmul.msk.f32.gmra.mxu3 %vm122_vm0, %v439_v55 }
 0x365   :  { %v361_v0 = vpop.f32.mrf.mxu3 }
 0x366   :  { %v364_v1 = vadd.f32 %v361_v0, %v340_v63 }
 0x368   :  { %929 = vtanh.f32 %v364_v1 }
 0x36d   :  { %v487_v3 = vpop.f32.mrf.mxu3 }
 0x36e   :  { %v930_v4 = vpop.eup %929  ;;  %v488_v5 = vadd.f32 %v1198_v2, %v487_v3 }
 0x36f   :  { %367 = vst.msk [vmem:[#allocation4 + $0x28] sm:$0xff] %vm122_vm0, %v930_v4  ;;  %875 = vmatmul.msk.f32.vlgmr.msra.gmra.mxu1 %vm122_vm0, %v930_v4 }
 0x370   :  { %511 = vst.msk [vmem:[#allocation3] sm:$0xff] %vm122_vm0, %v488_v5  ;;  %584 = vmatpush.msra.mxu1 %v1170_v59  ;;  %v989_v5 = vmov 32.0  }
 0x372   :  { %585 = vmatpush.msra.mxu1 %v1176_v60 }
 0x374   :  { %586 = vmatpush.msra.mxu1 %v1182_v61 }
 0x375   :  { %v490_v6 = vpop.f32.mrf.mxu3 }
 0x376   :  { %v491_v7 = vadd.f32 %v1198_v2, %v490_v6  ;;  %v440_v8 = vld [vmem:[#allocation4 + $0x28] sm:$0xff]  ;;  %587 = vmatpush.msra.mxu1 %v1191_v62 }
 0x377   :  { %882 = vmatmul.msk.f32.gmra.mxu3 %vm122_vm0, %v440_v8  ;;  %536 = vmatmul.f32.vlgmr.msrb.gmra.mxu1 %v988_v10  ;;  %v519_v22 = vld [vmem:[#allocation3] sm:$0xff] }
 0x378   :  { %512 = vst.msk [vmem:[#allocation3 + $0x8] sm:$0xff] %vm122_vm0, %v491_v7  ;;  %636 = vmatpush.msrb.mxu1 %v1170_v59 }
 0x37a   :  { %637 = vmatpush.msrb.mxu1 %v1176_v60 }
 0x37c   :  { %638 = vmatpush.msrb.mxu1 %v1182_v61 }
 0x37d   :  { %v493_v9 = vpop.f32.mrf.mxu3 }
 0x37e   :  { %v494_v11 = vadd.f32 %v1198_v2, %v493_v9  ;;  %639 = vmatpush.msrb.mxu1 %v1191_v62 }
 0x37f   :  { %v542_v36 = vld [vmem:[#allocation3 + $0x8] sm:$0xff] }
 0x380   :  { %513 = vst.msk [vmem:[#allocation3 + $0x10] sm:$0xff] %vm122_vm0, %v494_v11 }
 0x385   :  { %v496_v13 = vpop.f32.mrf.mxu3 }
 0x386   :  { %v497_v14 = vadd.f32 %v1198_v2, %v496_v13 }
 0x387   :  { %v568_v42 = vld [vmem:[#allocation3 + $0x10] sm:$0xff] }
 0x388   :  { %514 = vst.msk [vmem:[#allocation3 + $0x18] sm:$0xff] %vm122_vm0, %v497_v14 }
 0x38d   :  { %v499_v10 = vpop.f32.mrf.mxu3 }
 0x38e   :  { %v500_v15 = vadd.f32 %v1198_v2, %v499_v10 }
 0x38f   :  { %v594_v48 = vld [vmem:[#allocation3 + $0x18] sm:$0xff] }
 0x390   :  { %515 = vst.msk [vmem:[#allocation3 + $0x20] sm:$0xff] %vm122_vm0, %v500_v15 }
 0x397   :  { %v620_v52 = vld [vmem:[#allocation3 + $0x20] sm:$0xff] }
 0x3ec   :  { %v390_v20 = vpop.f32.mrf.mxu1 }
 0x3ed   :  { %v393_v21 = vadd.f32 %v390_v20, %v369_v19  ;;  %v765_v19 = vld [vmem:[%s1349_s10 + $0x10] sm:$0xff]  ;;  %v764_v20 = vld [vmem:[%s1349_s10 + $0x8] sm:$0xff] }
 0x3ef   :  { %931 = vtanh.f32 %v393_v21  ;;  %v763_v21 = vld [vmem:[%s1349_s10] sm:$0xff] }
 0x3f4   :  { %v537_v23 = vpop.f32.mrf.mxu1 }
 0x3f5   :  { %v932_v24 = vpop.eup %931  ;;  %v540_v25 = vadd.f32 %v537_v23, %v519_v22  ;;  %v810_v22 = vld [vmem:[%s1351_s12 + $0x78] sm:$0xff]  ;;  %v809_v23 = vld [vmem:[%s1351_s12 + $0x70] sm:$0xff] }
 0x3f6   :  { %396 = vst.msk [vmem:[#allocation4 + $0x30] sm:$0xff] %vm122_vm0, %v932_v24  ;;  %876 = vmatmul.msk.f32.vlgmr.msrb.gmra.mxu2 %vm122_vm0, %v932_v24  ;;  %815 = vmatpush.msrb.mxu0 %v810_v22  ;;  %v808_v24 = vld [vmem:[%s1351_s12 + $0x68] sm:$0xff] }
 0x3f7   :  { %933 = vtanh.f32 %v540_v25  ;;  %610 = vmatpush.msrb.mxu2 %v1170_v59 }
 0x3f8   :  { %816 = vmatpush.msrb.mxu0 %v809_v23 }
 0x3f9   :  { %611 = vmatpush.msrb.mxu2 %v1176_v60 }
 0x3fa   :  { %v502_v26 = vpop.f32.mrf.mxu3  ;;  %817 = vmatpush.msrb.mxu0 %v808_v24 }
 0x3fb   :  { %v503_v27 = vadd.f32 %v1198_v2, %v502_v26  ;;  %612 = vmatpush.msrb.mxu2 %v1182_v61 }
 0x3fd   :  { %v934_v28 = vpop.eup %933  ;;  %516 = vst.msk [vmem:[#allocation3 + $0x28] sm:$0xff] %vm122_vm0, %v503_v27  ;;  %v441_v29 = vld [vmem:[#allocation4 + $0x30] sm:$0xff]  ;;  %613 = vmatpush.msrb.mxu2 %v1191_v62  ;;  %v807_v27 = vld [vmem:[%s1351_s12 + $0x60] sm:$0xff] }
 0x3fe   :  { %883 = vmatmul.msk.f32.gmra.mxu3 %vm122_vm0, %v441_v29  ;;  %885 = vmatmul.msk.f32.vlgmr.msra.gmra.mxu2 %vm122_vm0, %v934_v28  ;;  %v806_v29 = vld [vmem:[%s1351_s12 + $0x58] sm:$0xff] }
 0x3ff   :  { %662 = vmatpush.msra.mxu2 %v1170_v59  ;;  %818 = vmatpush.msrb.mxu0 %v807_v27 }
 0x401   :  { %663 = vmatpush.msra.mxu2 %v1176_v60  ;;  %819 = vmatpush.msrb.mxu0 %v806_v29 }
 0x403   :  { %664 = vmatpush.msra.mxu2 %v1182_v61  ;;  %820 = vmatpush.msrb.mxu0 %v805_v30 }
 0x404   :  { %v646_v56 = vld [vmem:[#allocation3 + $0x28] sm:$0xff] }
 0x405   :  { %665 = vmatpush.msra.mxu2 %v1191_v62  ;;  %821 = vmatpush.msrb.mxu0 %v804_v31 }
 0x479   :  { %v419_v33 = vpop.f32.mrf.mxu2 }
 0x47a   :  { %v422_v34 = vadd.f32 %v419_v33, %v398_v32  ;;  %v803_v32 = vld [vmem:[%s1351_s12 + $0x40] sm:$0xff] }
 0x47b   :  { %822 = vmatpush.msrb.mxu0 %v803_v32 }
 0x47c   :  { %935 = vtanh.f32 %v422_v34  ;;  %v802_v34 = vld [vmem:[%s1351_s12 + $0x38] sm:$0xff] }
 0x47d   :  { %823 = vmatpush.msrb.mxu0 %v802_v34 }
 0x481   :  { %v505_v35 = vpop.f32.mrf.mxu3  ;;  %v563_v37 = vpop.f32.mrf.mxu2 }
 0x482   :  { %v936_v38 = vpop.eup %935  ;;  %v506_v39 = vadd.f32 %v1198_v2, %v505_v35  ;;  %v566_v40 = vadd.f32 %v563_v37, %v542_v36  ;;  %v801_v36 = vld [vmem:[%s1351_s12 + $0x30] sm:$0xff] }
 0x483   :  { %425 = vst.msk [vmem:[#allocation4 + $0x38] sm:$0xff] %vm122_vm0, %v936_v38  ;;  %v800_v38 = vld [vmem:[%s1351_s12 + $0x28] sm:$0xff]  ;;  %824 = vmatpush.msrb.mxu0 %v801_v36 }
 0x484   :  { %517 = vst.msk [vmem:[#allocation3 + $0x30] sm:$0xff] %vm122_vm0, %v506_v39  ;;  %937 = vtanh.f32 %v566_v40  ;;  %v799_v40 = vld [vmem:[%s1351_s12 + $0x20] sm:$0xff] }
 0x485   :  { %825 = vmatpush.msrb.mxu0 %v800_v38 }
 0x487   :  { %826 = vmatpush.msrb.mxu0 %v799_v40 }
 0x48a   :  { %v938_v41 = vpop.eup %937  ;;  %v442_v12 = vld [vmem:[#allocation4 + $0x38] sm:$0xff] }
 0x48b   :  { %884 = vmatmul.msk.f32.gmra.mxu3 %vm122_vm0, %v442_v12  ;;  %886 = vmatmul.msk.f32.vlgmr.msra.gmra.mxu1 %vm122_vm0, %v938_v41  ;;  %v798_v12 = vld [vmem:[%s1351_s12 + $0x18] sm:$0xff] }
 0x48c   :  { %688 = vmatpush.msra.mxu1 %v1170_v59  ;;  %827 = vmatpush.msrb.mxu0 %v798_v12 }
 0x48e   :  { %689 = vmatpush.msra.mxu1 %v1176_v60 }
 0x490   :  { %690 = vmatpush.msra.mxu1 %v1182_v61 }
 0x492   :  { %691 = vmatpush.msra.mxu1 %v1191_v62 }
 0x508   :  { %v589_v43 = vpop.f32.mrf.mxu1 }
 0x509   :  { %v592_v44 = vadd.f32 %v589_v43, %v568_v42  ;;  %v915_v43 = vld [vmem:[%s1347_s8] ss:$0 sm:$0xff] }
 0x50b   :  { %939 = vtanh.f32 %v592_v44  ;;  %v797_v44 = vld [vmem:[%s1351_s12 + $0x10] sm:$0xff] }
 0x50c   :  { %828 = vmatpush.msrb.mxu0 %v797_v44 }
 0x50e   :  { %v508_v45 = vpop.f32.mrf.mxu3 }
 0x50f   :  { %v509_v46 = vadd.f32 %v1198_v2, %v508_v45 }
 0x511   :  { %v940_v47 = vpop.eup %939  ;;  %518 = vst.msk [vmem:[#allocation3 + $0x38] sm:$0xff] %vm122_vm0, %v509_v46 }
 0x512   :  { %887 = vmatmul.msk.f32.vlgmr.msrb.gmra.mxu2 %vm122_vm0, %v940_v47  ;;  %v916_v47 = vld [vmem:[%s1348_s9] ss:$0 sm:$0xff] }
 0x513   :  { %714 = vmatpush.msrb.mxu2 %v1170_v59 }
 0x515   :  { %715 = vmatpush.msrb.mxu2 %v1176_v60  ;;  %v672_v60 = vld [vmem:[#allocation3 + $0x30] sm:$0xff] }
 0x517   :  { %716 = vmatpush.msrb.mxu2 %v1182_v61 }
 0x518   :  { %v698_v0 = vld [vmem:[#allocation3 + $0x38] sm:$0xff] }
 0x519   :  { %717 = vmatpush.msrb.mxu2 %v1191_v62 }
 0x595   :  { %v615_v49 = vpop.f32.mrf.mxu2 }
 0x596   :  { %v618_v50 = vadd.f32 %v615_v49, %v594_v48  ;;  %v796_v48 = vld [vmem:[%s1351_s12 + $0x8] sm:$0xff] }
 0x597   :  { %829 = vmatpush.msrb.mxu0 %v796_v48 }
 0x598   :  { %941 = vtanh.f32 %v618_v50 }
 0x59e   :  { %v942_v51 = vpop.eup %941 }
 0x59f   :  { %888 = vmatmul.msk.f32.vlgmr.msrb.gmra.mxu1 %vm122_vm0, %v942_v51  ;;  %v795_v51 = vld [vmem:[%s1351_s12] sm:$0xff] }
 0x5a0   :  { %786 = vmatpush.msrb.mxu1 %v766_v18  ;;  %830 = vmatpush.msrb.mxu0 %v795_v51 }
 0x5a2   :  { %787 = vmatpush.msrb.mxu1 %v765_v19 }
 0x5a4   :  { %788 = vmatpush.msrb.mxu1 %v764_v20 }
 0x5a6   :  { %789 = vmatpush.msrb.mxu1 %v763_v21 }
 0x61c   :  { %v641_v53 = vpop.f32.mrf.mxu1 }
 0x61d   :  { %v644_v54 = vadd.f32 %v641_v53, %v620_v52  ;;  %v917_v52 = vld [vmem:[%s1350_s11] ss:$0 sm:$0xff] }
 0x61f   :  { %943 = vtanh.f32 %v644_v54 }
 0x625   :  { %v944_v55 = vpop.eup %943 }
 0x626   :  { %889 = vmatmul.msk.f32.vlgmr.msra.gmra.mxu2 %vm122_vm0, %v944_v55 }
 0x6a9   :  { %v667_v57 = vpop.f32.mrf.mxu2 }
 0x6aa   :  { %v670_v58 = vadd.f32 %v667_v57, %v646_v56  ;;  %v918_v56 = vld [vmem:[%s1352_s13] ss:$0 sm:$0xff] }
 0x6ac   :  { %945 = vtanh.f32 %v670_v58 }
 0x6b2   :  { %v946_v59 = vpop.eup %945 }
 0x6b3   :  { %890 = vmatmul.msk.f32.vlgmr.msra.gmra.mxu1 %vm122_vm0, %v946_v59 }
 0x730   :  { %v693_v61 = vpop.f32.mrf.mxu1 }
 0x731   :  { %v696_v62 = vadd.f32 %v693_v61, %v672_v60 }
 0x733   :  { %947 = vtanh.f32 %v696_v62 }
 0x739   :  { %v948_v63 = vpop.eup %947 }
 0x73a   :  { %891 = vmatmul.msk.f32.vlgmr.msrb.gmra.mxu2 %vm122_vm0, %v948_v63 }
 0x7bd   :  { %v719_v1 = vpop.f32.mrf.mxu2 }
 0x7be   :  { %v722_v2 = vadd.f32 %v719_v1, %v698_v0 }
 0x7c0   :  { %949 = vtanh.f32 %v722_v2 }
 0x7c1   :  { %951 = vrcp.f32 %v989_v5 }
 0x7c6   :  { %v950_v3 = vpop.eup %949 }
 0x7c7   :  { %v724_v4 = vsel %vm122_vm0, %v950_v3, 0.0  ;;  %v952_v6 = vpop.eup %951 }
 0x7c8   :  { %725 = vadd.xlane.f32.xlu0 %v724_v4  ;;  %v728_v7 = vmul.f32 32.0, %v952_v6  ;;  %vm732_vm1 = vweird.f32 %v952_v6 }
 0x7ca   :  { %v729_v8 = vsub.f32 1.0, %v728_v7 }
 0x7cc   :  { %v730_v9 = vmul.f32 %v952_v6, %v729_v8 }
 0x7ce   :  { %v731_v11 = vadd.f32 %v952_v6, %v730_v9 }
 0x7d0   :  { %v733_v13 = vsel %vm732_vm1, %v952_v6, %v731_v11 }
 0x83b   :  { %v726_v14 = vpop.xlane.xlu0 %725 }
 0x83c   :  { %v734_v10 = vmul.f32 %v733_v13, %v726_v14 }
 0x83e   :  { %v735_v15 = vsub.f32 %v950_v3, %v734_v10 }
 0x840   :  { %v736_v16 = vmul.f32 %v735_v15, %v735_v15 }
 0x842   :  { %v737_v17 = vsel %vm122_vm0, %v736_v16, 0.0 }
 0x843   :  { %738 = vadd.xlane.f32.xlu0 %v737_v17 }
 0x8b6   :  { %v739_v25 = vpop.xlane.xlu0 %738 }
 0x8b7   :  { %v740_v26 = vmul.f32 %v739_v25, %v733_v13 }
 0x8b9   :  { %v741_v28 = vadd.f32 1e-05, %v740_v26 }
 0x8bb   :  { %953 = vrsqrt.f32 %v741_v28  ;;  %vm748_vm3 = vweird.f32 %v741_v28 }
 0x8c1   :  { %v954_v33 = vpop.eup %953 }
 0x8c2   :  { %v743_v35 = vmul.f32 %v954_v33, %v741_v28  ;;  %vm749_vm2 = vweird.f32 %v954_v33 }
 0x8c3   :  { %vm750_vm4 = vmor %vm748_vm3, %vm749_vm2 }
 0x8c4   :  { %v744_v37 = vmul.f32 %v954_v33, %v743_v35 }
 0x8c6   :  { %v745_v39 = vmul.f32 0.5, %v744_v37 }
 0x8c8   :  { %v746_v41 = vsub.f32 1.5, %v745_v39 }
 0x8ca   :  { %v747_v42 = vmul.f32 %v954_v33, %v746_v41 }
 0x8cc   :  { %v751_v45 = vsel %vm750_vm4, %v954_v33, %v747_v42 }
 0x8cd   :  { %v752_v46 = vmul.f32 %v751_v45, %v735_v15 }
 0x8cf   :  { %v757_v49 = vmul.f32 %v915_v43, %v752_v46 }
 0x8d1   :  { %v762_v50 = vadd.f32 %v916_v47, %v757_v49 }
 0x8d3   :  { %892 = vmatmul.msk.f32.vlgmr.msrb.gmra.mxu1 %vm122_vm0, %v762_v50 }
 0x950   :  { %v791_v53 = vpop.f32.mrf.mxu1 }
 0x951   :  { %v792_v54 = vadd.f32 %v917_v52, %v791_v53 }
 0x953   :  { %v794_v55 = vmax.f32 %v792_v54, 0.0 }
 0x955   :  { %831 = vmatmul.f32.vlgmr.msrb.gmra.mxu0 %v794_v55 }
 0x9d2   :  { %v832_v57 = vpop.f32.mrf.mxu0 }
 0x9d3   :  { %v833_v58 = vadd.f32 %v918_v56, %v832_v57 }
 0x9d5   :  { %835 = vst [vmem:[%s1353_s14] sm:$0xff] %v833_v58 }
 0x9d6   :  { %840 = vsyncmov [#allocation5] }
 0x9d9   :  { %s841_s12 = vpop.sfrf %840 }
 0x9da   :  { %p893_p2 = scmp.ne.s32.totalorder %s841_s12, 0 }
 0x9dc   :  { %845 = shalt.err (%p893_p2)  }

</bundles_post_ra>
